<compile_context>
chip_gen: v5e
topology: v5e:2x2
jax: 0.10.0
libtpu: 0.0.40
codegen_flags: <defaults>
</compile_context>

<pallas_src>
import jax
import jax.numpy as jnp
from jax.experimental import pallas as pl
from jax.experimental.pallas import tpu as pltpu

IN_SIZE = 32
HIDDEN = [64, 64]
OUT_SIZE = 16
N_LAYERS = len(HIDDEN) + 1

K_PAD = 128   # padded contraction width (lane-dense; removes in-kernel lane slicing)
N_PAD = 128   # padded output width of every stacked weight


def mlp_kernel(x_ref, w_ref, b_ref, o_ref):
    """Fused 3-layer MLP, single invocation (no grid).

    x_ref: (B, IN_SIZE)             f32   raw input (cast to bf16 in-kernel)
    w_ref: (N_LAYERS, K_PAD, N_PAD) bf16  stacked zero-padded weights, (in, out) layout
    b_ref: (N_LAYERS, 1, N_PAD)     f32   stacked zero-padded biases
    o_ref: (B, OUT_SIZE)            f32   final output (masked store, tiny)
    """
    # Layer 0: contract only the real IN_SIZE rows via a static (free) ref slice.
    h = x_ref[...].astype(jnp.bfloat16)                                   # (B, 32) bf16
    acc = jnp.dot(h, w_ref[0, :IN_SIZE, :],
                  preferred_element_type=jnp.float32)                     # MXU, f32 acc
    acc = jnp.maximum(acc + b_ref[0], 0.0)                                # (B, 128) f32
    h = acc.astype(jnp.bfloat16)                                          # lane-dense, no slice

    for i in range(1, N_LAYERS):                                          # static, unrolled
        acc = jnp.dot(h, w_ref[i], preferred_element_type=jnp.float32)    # (B, 128) f32
        acc = acc + b_ref[i]
        if i < N_LAYERS - 1:
            h = jnp.maximum(acc, 0.0).astype(jnp.bfloat16)                # ReLU, keep 128 lanes
        else:
            # No final activation. Padded cols are exact zeros (zero W cols + zero b),
            # so the first OUT_SIZE columns are the module's output.
            o_ref[...] = acc[:, :OUT_SIZE].astype(o_ref.dtype)


def mlp_forward(x, w_stack, b_stack):
    """x: (B, IN_SIZE) f32. w_stack: (3, K_PAD, N_PAD) bf16. b_stack: (3, 1, N_PAD) f32."""
    B = x.shape[0]
    flops = 2 * B * (IN_SIZE * N_PAD + (N_LAYERS - 1) * K_PAD * N_PAD)
    bytes_accessed = (x.size * 4 + w_stack.size * 2 + b_stack.size * 4
                      + B * OUT_SIZE * 4)
    vmem = pl.BlockSpec(memory_space=pltpu.MemorySpace.VMEM)
    return pl.pallas_call(
        mlp_kernel,
        out_shape=jax.ShapeDtypeStruct((B, OUT_SIZE), jnp.float32),
        in_specs=[vmem, vmem, vmem],
        out_specs=vmem,
        cost_estimate=pl.CostEstimate(flops=flops, transcendentals=0,
                                      bytes_accessed=bytes_accessed),
    )(x, w_stack, b_stack)


def init_params(key):
    """Deterministic init matching nn.Linear shapes; packed + zero-padded stacks.

    Per-layer W is stored as (in, out) — the transpose of PyTorch's (out, in) —
    so the kernel computes x @ W + b. All rows/cols beyond (fan_in, fan_out) and
    all padded bias entries are exactly zero (correctness invariant).
    """
    sizes = [IN_SIZE] + HIDDEN + [OUT_SIZE]
    w_stack = jnp.zeros((N_LAYERS, K_PAD, N_PAD), jnp.float32)
    b_stack = jnp.zeros((N_LAYERS, 1, N_PAD), jnp.float32)
    for li, (fan_in, fan_out) in enumerate(zip(sizes[:-1], sizes[1:])):
        key, kw, kb = jax.random.split(key, 3)
        scale = 1.0 / jnp.sqrt(jnp.float32(fan_in))
        w = jax.random.uniform(kw, (fan_in, fan_out), jnp.float32, -scale, scale)
        b = jax.random.uniform(kb, (fan_out,), jnp.float32, -scale, scale)
        w_stack = w_stack.at[li, :fan_in, :fan_out].set(w)
        b_stack = b_stack.at[li, 0, :fan_out].set(b)
    return w_stack.astype(jnp.bfloat16), b_stack


def reference_forward(x, w_stack, b_stack):
    """Pure-JAX reference of the module forward at matching (bf16 weight) precision."""
    w = w_stack.astype(jnp.float32)
    h = x.astype(jnp.bfloat16).astype(jnp.float32)                   # (B, 32)
    acc = h @ w[0, :IN_SIZE, :] + b_stack[0]
    h = jnp.maximum(acc, 0.0).astype(jnp.bfloat16).astype(jnp.float32)
    out = None
    for i in range(1, N_LAYERS):
        acc = h @ w[i] + b_stack[i]
        if i < N_LAYERS - 1:
            h = jnp.maximum(acc, 0.0).astype(jnp.bfloat16).astype(jnp.float32)
        else:
            out = acc
    return out[:, :OUT_SIZE]


if __name__ == "__main__":
    key = jax.random.PRNGKey(0)
    key, kx = jax.random.split(key)
    batch = 8
    x = jax.random.normal(kx, (batch, IN_SIZE), jnp.float32)

    w_stack, b_stack = init_params(key)

    # TODO(synk): nn.Dropout omitted (use_dropout=False; identity at inference).
    out = mlp_forward(x, w_stack, b_stack)
    out = jax.block_until_ready(out)

    ref = reference_forward(x, w_stack, b_stack)
    assert out.shape == (batch, OUT_SIZE)
    assert jnp.allclose(out, ref, atol=1e-2, rtol=1e-2), "mismatch vs JAX reference"

    print("KERNEL_OK")
</pallas_src>

<mosaic_0001>
module attributes {stable_mosaic.version = 11 : i64} {
  func.func @mlp_kernel(%arg0: memref<8x32xf32, #tpu.memory_space<vmem>>, %arg1: memref<3x128x128xbf16, #tpu.memory_space<vmem>>, %arg2: memref<3x1x128xf32, #tpu.memory_space<vmem>>, %arg3: memref<8x16xf32, #tpu.memory_space<vmem>>) attributes {dimension_semantics = [], scalar_prefetch = 0 : i64, scratch_operands = 0 : i64, tpu.core_type = #tpu.core_type<tc>} {
    %c0 = arith.constant 0 : index
    %c0_0 = arith.constant 0 : index
    %0 = vector.load %arg0[%c0, %c0_0] : memref<8x32xf32, #tpu.memory_space<vmem>>, vector<8x32xf32>
    %1 = arith.truncf %0 : vector<8x32xf32> to vector<8x32xbf16>
    %c0_1 = arith.constant 0 : index
    %c0_2 = arith.constant 0 : index
    %c0_3 = arith.constant 0 : index
    %2 = vector.load %arg1[%c0_1, %c0_2, %c0_3] : memref<3x128x128xbf16, #tpu.memory_space<vmem>>, vector<1x32x128xbf16>
    %3 = vector.shape_cast %2 : vector<1x32x128xbf16> to vector<32x128xbf16>
    %cst = arith.constant dense<0.000000e+00> : vector<8x128xf32>
    %4 = tpu.matmul %1, %3, %cst {dimension_numbers = #tpu.dot_dimension_numbers<[1], [0], [0], [1], [0, 0, 1, 1], [], []>} : vector<8x32xbf16>, vector<32x128xbf16>, vector<8x128xf32> -> vector<8x128xf32>
    %c0_4 = arith.constant 0 : index
    %c0_5 = arith.constant 0 : index
    %c0_6 = arith.constant 0 : index
    %5 = vector.load %arg2[%c0_4, %c0_5, %c0_6] : memref<3x1x128xf32, #tpu.memory_space<vmem>>, vector<1x1x128xf32>
    %6 = vector.shape_cast %5 : vector<1x1x128xf32> to vector<1x128xf32>
    %7 = vector.broadcast %6 : vector<1x128xf32> to vector<8x128xf32>
    %8 = arith.addf %4, %7 : vector<8x128xf32>
    %cst_7 = arith.constant 0.000000e+00 : f32
    %9 = vector.broadcast %cst_7 : f32 to vector<8x128xf32>
    %10 = arith.maximumf %8, %9 : vector<8x128xf32>
    %11 = arith.truncf %10 : vector<8x128xf32> to vector<8x128xbf16>
    %c1 = arith.constant 1 : index
    %c0_8 = arith.constant 0 : index
    %c0_9 = arith.constant 0 : index
    %12 = vector.load %arg1[%c1, %c0_8, %c0_9] : memref<3x128x128xbf16, #tpu.memory_space<vmem>>, vector<1x128x128xbf16>
    %13 = vector.shape_cast %12 : vector<1x128x128xbf16> to vector<128x128xbf16>
    %cst_10 = arith.constant dense<0.000000e+00> : vector<8x128xf32>
    %14 = tpu.matmul %11, %13, %cst_10 {dimension_numbers = #tpu.dot_dimension_numbers<[1], [0], [0], [1], [0, 0, 1, 1], [], []>} : vector<8x128xbf16>, vector<128x128xbf16>, vector<8x128xf32> -> vector<8x128xf32>
    %c1_11 = arith.constant 1 : index
    %c0_12 = arith.constant 0 : index
    %c0_13 = arith.constant 0 : index
    %15 = vector.load %arg2[%c1_11, %c0_12, %c0_13] : memref<3x1x128xf32, #tpu.memory_space<vmem>>, vector<1x1x128xf32>
    %16 = vector.shape_cast %15 : vector<1x1x128xf32> to vector<1x128xf32>
    %17 = vector.broadcast %16 : vector<1x128xf32> to vector<8x128xf32>
    %18 = arith.addf %14, %17 : vector<8x128xf32>
    %cst_14 = arith.constant 0.000000e+00 : f32
    %19 = vector.broadcast %cst_14 : f32 to vector<8x128xf32>
    %20 = arith.maximumf %18, %19 : vector<8x128xf32>
    %21 = arith.truncf %20 : vector<8x128xf32> to vector<8x128xbf16>
    %c2 = arith.constant 2 : index
    %c0_15 = arith.constant 0 : index
    %c0_16 = arith.constant 0 : index
    %22 = vector.load %arg1[%c2, %c0_15, %c0_16] : memref<3x128x128xbf16, #tpu.memory_space<vmem>>, vector<1x128x128xbf16>
    %23 = vector.shape_cast %22 : vector<1x128x128xbf16> to vector<128x128xbf16>
    %cst_17 = arith.constant dense<0.000000e+00> : vector<8x128xf32>
    %24 = tpu.matmul %21, %23, %cst_17 {dimension_numbers = #tpu.dot_dimension_numbers<[1], [0], [0], [1], [0, 0, 1, 1], [], []>} : vector<8x128xbf16>, vector<128x128xbf16>, vector<8x128xf32> -> vector<8x128xf32>
    %c2_18 = arith.constant 2 : index
    %c0_19 = arith.constant 0 : index
    %c0_20 = arith.constant 0 : index
    %25 = vector.load %arg2[%c2_18, %c0_19, %c0_20] : memref<3x1x128xf32, #tpu.memory_space<vmem>>, vector<1x1x128xf32>
    %26 = vector.shape_cast %25 : vector<1x1x128xf32> to vector<1x128xf32>
    %27 = vector.broadcast %26 : vector<1x128xf32> to vector<8x128xf32>
    %28 = arith.addf %24, %27 : vector<8x128xf32>
    %29 = vector.extract_strided_slice %28 {offsets = [0, 0], sizes = [8, 16], strides = [1, 1]} : vector<8x128xf32> to vector<8x16xf32>
    %c0_21 = arith.constant 0 : index
    %c0_22 = arith.constant 0 : index
    %30 = vector.load %arg3[%c0_21, %c0_22] : memref<8x16xf32, #tpu.memory_space<vmem>>, vector<8x16xf32>
    tpu.vector_store %arg3[%c0_21, %c0_22], %29 {strides = array<i32>} : memref<8x16xf32, #tpu.memory_space<vmem>>, vector<8x16xf32>,
    return
  }
}

</mosaic_0001>

<bundles_post_ra>
// kernel: tpu_custom_call.1
= control target key start
LH: loop header
LB: loop body
LE: loop exit
PB: predicated region body
PF: predicated region fallthrough
CT: control target
= control target key end

     0   :  { %8 = vsyncpa [#allocation3], 0  ;;  %s534_s0 = inlined_call_operand.hbm [shape: f32[8,32], index: 0, kind: input, shape index: {}]   ;;  %s535_s1 = inlined_call_operand.hbm [shape: bf16[3,128,128], index: 1, kind: input, shape index: {}]   ;;  %s536_s2 = inlined_call_operand.hbm [shape: f32[3,1,128], index: 2, kind: input, shape index: {}]   ;;  %s537_s3 = inlined_call_operand.hbm [shape: f32[8,16], index: 3, kind: output, shape index: {}]  }
   0x1   :  { %9 = vsyncpa [#allocation6], 0  ;;  %s26_s14 = sshll.u32 %s535_s1, 4  ;;  %s27_s14 = int_to_ptr.hbm [resolvable:$true] %s26_s14 }
   0x2   :  { %10 = vsyncpa [#allocation4], 0  ;;  %s494_s15 = smov [#allocation5]   ;;  %s16_s19 = sshll.u32 %s534_s0, 4  ;;  %s17_s19 = int_to_ptr.hbm [resolvable:$true] %s16_s19 }
   0x3   :  { %s28_s16 = sshll.u32 %s494_s15, 4  ;;  %s495_s20 = smov 64   ;;  %s29_s16 = int_to_ptr.vmem [resolvable:$true] %s28_s16 }
   0x4   :  { %s496_s21 = smov 4   ;;  %s497_s22 = smov [#allocation2]  }
   0x5   :  { %34 = dma.hbm_to_vmem [thread:$0]  %s27_s14, 3072, %s29_s16, [#allocation6], %s495_s20, %s495_s20, %s496_s21  }
   0x6   :  { %s18_s23 = sshll.u32 %s497_s22, 4  ;;  %s39_s26 = sshll.u32 %s536_s2, 4  ;;  %s19_s23 = int_to_ptr.vmem [resolvable:$true] %s18_s23  ;;  %s40_s26 = int_to_ptr.hbm [resolvable:$true] %s39_s26 }
   0x7   :  { %21 = dma.hbm_to_vmem [thread:$0]  %s17_s19, 128, %s19_s23, [#allocation3]  }
   0x8   :  { %s498_s1 = smov [#allocation7]   ;;  %s499_s28 = smov 16  }
   0x9   :  { %s41_s27 = sshll.u32 %s498_s1, 4  ;;  %s500_s29 = smov 1   ;;  %s42_s27 = int_to_ptr.vmem [resolvable:$true] %s41_s27 }
   0xa   :  { %47 = dma.hbm_to_vmem [thread:$0]  %s40_s26, 48, %s42_s27, [#allocation6], %s499_s28, %s499_s28, %s500_s29  }
   0xb   :  { %488 = dma.done.wait [#allocation3], 128  }
   0xc   :  { %489 = vsyncadd [#allocation3], 4294967168 }
   0xd   :  { %490 = dma.done.wait [#allocation6], 3120  }
   0xe   :  { %491 = vsyncadd [#allocation6], 4294964176  ;;  %v364_v0 = vld [vmem:[#allocation5 + $0x8] sm:$0xff]  ;;  %v372_v1 = vld [vmem:[#allocation5 + $0x78] sm:$0xff]  ;;  %vm83_vm0 = vcmask 261120   ;;  %s501_s0 = smov [#allocation8]  }
   0xf   :  { %93 = vmatpush.bf16.msra.mxu0 %v364_v0  ;;  %v363_v2 = vld [vmem:[#allocation5] sm:$0xff]  ;;  %v61_v3 = vld [vmem:[#allocation2] sm:$0xff]  ;;  %172 = vmatpush.bf16.msra.mxu1 %v372_v1  ;;  %v371_v4 = vld [vmem:[#allocation5 + $0x70] sm:$0xff]  ;;  %s277_s2 = sshll.u32 %s501_s0, 4  ;;  %s279_s5 = sshll.u32 %s537_s3, 4  ;;  %vm270_vm1 = vcmask 130048   ;;  %s278_s2 = int_to_ptr.vmem [resolvable:$true] %s277_s2  ;;  %s280_s5 = int_to_ptr.hbm [resolvable:$true] %s279_s5 }
  0x10   :  { %v62_v5 = vpack.c.bf16 %v61_v3, %v61_v3  ;;  %v370_v6 = vld [vmem:[#allocation5 + $0x68] sm:$0xff]  ;;  %v369_v7 = vld [vmem:[#allocation5 + $0x60] sm:$0xff]  ;;  %v368_v8 = vld [vmem:[#allocation5 + $0x58] sm:$0xff] }
  0x11   :  { %v367_v9 = vld [vmem:[#allocation5 + $0x50] sm:$0xff]  ;;  %v366_v10 = vld [vmem:[#allocation5 + $0x48] sm:$0xff]  ;;  %v365_v11 = vld [vmem:[#allocation5 + $0x40] sm:$0xff] }
  0x12   :  { %v380_v12 = vld [vmem:[#allocation5 + $0xb8] sm:$0xff]  ;;  %v379_v13 = vld [vmem:[#allocation5 + $0xb0] sm:$0xff]  ;;  %v378_v14 = vld [vmem:[#allocation5 + $0xa8] sm:$0xff] }
  0x13   :  { %94 = vmatpush.bf16.msra.mxu0 %v363_v2  ;;  %173 = vmatpush.bf16.msra.mxu1 %v371_v4  ;;  %v377_v15 = vld [vmem:[#allocation5 + $0xa0] sm:$0xff]  ;;  %v376_v16 = vld [vmem:[#allocation5 + $0x98] sm:$0xff]  ;;  %v375_v17 = vld [vmem:[#allocation5 + $0x90] sm:$0xff] }
  0x14   :  { %257 = vmatpush.bf16.msra.mxu2 %v380_v12  ;;  %v389_v18 = vld [vmem:[#allocation7] ss:$0 sm:$0xff]  ;;  %v374_v24 = vld [vmem:[#allocation5 + $0x88] sm:$0xff]  ;;  %v390_v26 = vld [vmem:[#allocation7 + $0x1] ss:$0 sm:$0xff] }
  0x15   :  { %v373_v25 = vld [vmem:[#allocation5 + $0x80] sm:$0xff] }
  0x16   :  { %298 = vmatmul.msk.bf16.vlgmr.msra.gmra.mxu0 %vm83_vm0, %v62_v5  ;;  %v391_v32 = vld [vmem:[#allocation7 + $0x2] ss:$0 sm:$0xff] }
  0x17   :  { %174 = vmatpush.bf16.msra.mxu1 %v370_v6 }
  0x18   :  { %258 = vmatpush.bf16.msra.mxu2 %v379_v13 }
  0x1b   :  { %175 = vmatpush.bf16.msra.mxu1 %v369_v7 }
  0x1c   :  { %259 = vmatpush.bf16.msra.mxu2 %v378_v14 }
  0x1f   :  { %176 = vmatpush.bf16.msra.mxu1 %v368_v8 }
  0x20   :  { %260 = vmatpush.bf16.msra.mxu2 %v377_v15 }
  0x23   :  { %177 = vmatpush.bf16.msra.mxu1 %v367_v9 }
  0x24   :  { %261 = vmatpush.bf16.msra.mxu2 %v376_v16 }
  0x27   :  { %178 = vmatpush.bf16.msra.mxu1 %v366_v10 }
  0x28   :  { %262 = vmatpush.bf16.msra.mxu2 %v375_v17 }
  0x2b   :  { %179 = vmatpush.bf16.msra.mxu1 %v365_v11 }
  0x2c   :  { %263 = vmatpush.bf16.msra.mxu2 %v374_v24 }
  0x30   :  { %264 = vmatpush.bf16.msra.mxu2 %v373_v25 }
  0x93   :  { %v96_v19 = vpop.f32.mrf.mxu0 }
  0x94   :  { %v97_v20 = vadd.f32 %v389_v18, %v96_v19 }
  0x96   :  { %v100_v21 = vmax.f32 %v97_v20, 0.0 }
  0x98   :  { %v101_v22 = vpack.c.bf16 %v100_v21, %v100_v21 }
  0x9a   :  { %180 = vmatmul.bf16.vlgmr.msra.gmra.mxu1 %v101_v22 }
  0x9b   :  { %v98_v23 = vpop.f32.mrf.mxu0 }
 0x117   :  { %v181_v27 = vpop.f32.mrf.mxu1 }
 0x118   :  { %v182_v28 = vadd.f32 %v390_v26, %v181_v27 }
 0x11a   :  { %v185_v29 = vmax.f32 %v182_v28, 0.0 }
 0x11c   :  { %v186_v30 = vpack.c.bf16 %v185_v29, %v185_v29 }
 0x11e   :  { %265 = vmatmul.bf16.vlgmr.msra.gmra.mxu2 %v186_v30 }
 0x11f   :  { %v183_v31 = vpop.f32.mrf.mxu1 }
 0x1a1   :  { %v266_v33 = vpop.f32.mrf.mxu2 }
 0x1a2   :  { %v267_v34 = vadd.f32 %v391_v32, %v266_v33 }
 0x1a4   :  { %271 = vst.msk [vmem:[#allocation8] sm:$0xff] %vm270_vm1, %v267_v34 }
 0x1a5   :  { %282 = dma.vmem_to_hbm [thread:$0]  %s278_s2, 128, %s280_s5, [#allocation4]  }
 0x1a9   :  { %v268_v35 = vpop.f32.mrf.mxu2 }
 0x1aa   :  { %492 = dma.done.wait [#allocation4], 128  }
 0x1ab   :  { %493 = vsyncadd [#allocation4], 4294967168 }
 0x1ac   :  { %287 = vsyncpa [#allocation3], 1 }
 0x1ad   :  { %288 = vsyncpa [#allocation6], 1 }
 0x1ae   :  { %289 = vsyncpa [#allocation4], 1 }

</bundles_post_ra>
